<compile_context>
chip_gen: v6e
topology: v6e:2x2x1
jax: 0.10.0
libtpu: 0.0.40
codegen_flags: <defaults>
</compile_context>

<pallas_src>
import functools
import math

import jax
import jax.numpy as jnp
from jax.experimental import pallas as pl
from jax.experimental.pallas import tpu as pltpu


def build_pe_table(d_model: int, max_len: int = 50) -> jnp.ndarray:
    """Deterministic sin/cos positional-encoding table, shape (max_len, d_model).

    Assumes even d_model (same constraint as the PyTorch original).
    """
    position = jnp.arange(0, max_len, dtype=jnp.float32)[:, None]            # (L, 1)
    div_term = jnp.exp(
        jnp.arange(0, d_model, 2, dtype=jnp.float32) * (-math.log(10000.0) / d_model)
    )                                                                        # (D/2,)
    pe = jnp.zeros((max_len, d_model), dtype=jnp.float32)
    pe = pe.at[:, 0::2].set(jnp.sin(position * div_term))
    pe = pe.at[:, 1::2].set(jnp.cos(position * div_term))
    return pe


# ---------------------------------------------------------------------------
# Kernels (pure DMA-bound elementwise add; VPU/XLU work below is free filler)
# ---------------------------------------------------------------------------
def _add_bcast_kernel(x_ref, pe_ref, o_ref):
    # x_ref / o_ref: (ts, B, D);  pe_ref: (ts, 1, D) float32.
    # Broadcast PE over the batch (sublane) axis in-kernel; accumulate in f32.
    o_ref[...] = (x_ref[...].astype(jnp.float32) + pe_ref[...]).astype(o_ref.dtype)
    # TODO(synk): training-mode dropout (p=0.1) not applied; matches eval() semantics.


def _add_replicate_kernel(x_ref, pe_ref, o_ref, *, batch: int):
    # x_ref / o_ref: (ts, B*D);  pe_ref: (ts, D) float32.
    # Replicate PE across batch along the lane axis in-kernel (lane-aligned concat:
    # this path is only taken when D % 128 == 0), so no batch-replicated PE array is
    # ever materialized in HBM.
    pe = pe_ref[...]
    if batch > 1:
        pe = jnp.concatenate([pe] * batch, axis=-1)
    o_ref[...] = (x_ref[...].astype(jnp.float32) + pe).astype(o_ref.dtype)


# ---------------------------------------------------------------------------
# Tiling / VMEM budgeting with physical (padded) tile sizes
# ---------------------------------------------------------------------------
# Total padded, double-buffered working set (x-in + pe-in + out).  ~24 MiB gives
# ~6 MiB x tiles (amortizes the ~0.35 us/step overhead even at v7x's 3.2 TB/s HBM),
# and the explicit 48 MiB scoped-VMEM limit still fits v7x's 64 MiB physical VMEM
# while being far below v5e/v6e's 128 MiB.
_VMEM_BUDGET_BYTES = 24 * 1024 * 1024
_VMEM_LIMIT_BYTES = 48 * 1024 * 1024


def _round_up(n: int, m: int) -> int:
    return ((n + m - 1) // m) * m


def _pick_ts(seq_len: int, per_row_bytes: int, multiple: int) -> int:
    """Rows of S per block, from the padded per-row byte cost of all buffers."""
    ts = max(_VMEM_BUDGET_BYTES // max(per_row_bytes, 1), 1)
    ts = max((ts // multiple) * multiple, multiple)
    # Give the v7x megacore (and DMA-in/DMA-out overlap) at least 2 grid steps on
    # anything that isn't tiny.
    if seq_len >= max(2 * multiple, 16):
        ts = min(ts, _round_up(pl.cdiv(seq_len, 2), multiple))
    return min(ts, seq_len)   # full-extent block is always a legal block shape


def positional_encoding(x: jnp.ndarray, pe_table: jnp.ndarray) -> jnp.ndarray:
    """x: (S, B, D); pe_table: (max_len, D) f32. Returns x + pe[:S, None, :] (eval mode)."""
    S, B, D = x.shape
    assert S <= pe_table.shape[0], "sequence length exceeds the PE table's max_len"
    pe = pe_table[:S].astype(jnp.float32)            # keep f32: add accumulates in f32
    itemsize = jnp.dtype(x.dtype).itemsize
    sub = max(8, 32 // itemsize)                     # physical sublane granularity
    lane_d = _round_up(D, 128)

    cost = pl.CostEstimate(
        flops=S * B * D,
        transcendentals=0,
        bytes_accessed=2 * S * B * D * itemsize + S * D * 4,
    )
    cparams = pltpu.CompilerParams(
        dimension_semantics=("parallel",),
        vmem_limit_bytes=_VMEM_LIMIT_BYTES,
    )

    if D % 128 == 0 and B % 8 != 0:
        # Collapsed lane-dense path for small / ragged batch: (B, D) -> W lanes, so the
        # x/out blocks carry no sublane padding and stores are unmasked (W % 128 == 0).
        W = B * D
        x2 = x.reshape(S, W)
        x_row = _round_up(W, 128) * itemsize                 # per S-row, x and out
        pe_row = lane_d * 4                                  # per S-row, f32 PE block
        ts = _pick_ts(S, 2 * (2 * x_row + pe_row), multiple=sub)
        out2 = pl.pallas_call(
            functools.partial(_add_replicate_kernel, batch=B),
            out_shape=jax.ShapeDtypeStruct((S, W), x.dtype),
            grid_spec=pl.GridSpec(
                grid=(pl.cdiv(S, ts),),
                in_specs=[
                    pl.BlockSpec((ts, W), lambda s: (s, 0)),
                    pl.BlockSpec((ts, D), lambda s: (s, 0)),
                ],
                out_specs=pl.BlockSpec((ts, W), lambda s: (s, 0)),
            ),
            compiler_params=cparams,
            cost_estimate=cost,
            input_output_aliases={0: 0},   # in-place add: no extra HBM output alloc
        )(x2, pe)
        return out2.reshape(S, B, D)

    # General 3-D path: full d_model on the lane axis; PE kept as an (S, 1, D) table
    # (no batch replication in HBM) and broadcast over the batch sublanes in-kernel.
    # NOTE: for B < 8 or D < 128 the blocks carry sublane/lane padding and stores are
    # masked; those tensors are tiny (max_len=50), so we accept that knowingly.
    pe3 = pe.reshape(S, 1, D)
    x_row = _round_up(B, sub) * lane_d * itemsize            # padded (B, D) page
    pe_row = 8 * lane_d * 4                                  # (1, D) page pads 1 -> 8 sublanes
    ts = _pick_ts(S, 2 * (2 * x_row + pe_row), multiple=1)
    out = pl.pallas_call(
        _add_bcast_kernel,
        out_shape=jax.ShapeDtypeStruct((S, B, D), x.dtype),
        grid_spec=pl.GridSpec(
            grid=(pl.cdiv(S, ts),),
            in_specs=[
                pl.BlockSpec((ts, B, D), lambda s: (s, 0, 0)),
                pl.BlockSpec((ts, 1, D), lambda s: (s, 0, 0)),
            ],
            out_specs=pl.BlockSpec((ts, B, D), lambda s: (s, 0, 0)),
        ),
        compiler_params=cparams,
        cost_estimate=cost,
        input_output_aliases={0: 0},       # in-place add: no extra HBM output alloc
    )(x, pe3)
    return out


if __name__ == "__main__":
    max_len = 50

    # --- 1) module-typical small shape (3-D path: D < 128, B < 8) ---
    S, B, D = 8, 2, 32
    x = jax.random.normal(jax.random.PRNGKey(0), (S, B, D), dtype=jnp.float32)
    pe_table = build_pe_table(D, max_len=max_len)
    ref = x + pe_table[:S][:, None, :]
    out = jax.block_until_ready(positional_encoding(x, pe_table))
    assert out.shape == (S, B, D)
    assert jnp.allclose(out, ref, atol=1e-6), "mismatch vs reference (3-D small path)"

    # --- 2) collapsed lane-dense path (D % 128 == 0, B < 8) ---
    S2, B2, D2 = 16, 2, 128
    x2 = jax.random.normal(jax.random.PRNGKey(1), (S2, B2, D2), dtype=jnp.float32)
    pe_table2 = build_pe_table(D2, max_len=max_len)
    ref2 = x2 + pe_table2[:S2][:, None, :]
    out2 = jax.block_until_ready(positional_encoding(x2, pe_table2))
    assert jnp.allclose(out2, ref2, atol=1e-6), "mismatch vs reference (collapsed path)"

    # --- 3) dense 3-D path (D % 128 == 0, B % 8 == 0) ---
    S3, B3, D3 = 16, 8, 128
    x3 = jax.random.normal(jax.random.PRNGKey(2), (S3, B3, D3), dtype=jnp.float32)
    pe_table3 = build_pe_table(D3, max_len=max_len)
    ref3 = x3 + pe_table3[:S3][:, None, :]
    out3 = jax.block_until_ready(positional_encoding(x3, pe_table3))
    assert jnp.allclose(out3, ref3, atol=1e-6), "mismatch vs reference (dense 3-D path)"

    # --- 4) bf16 input: add accumulates in f32, result cast back to bf16 ---
    x4 = x2.astype(jnp.bfloat16)
    ref4 = (x4.astype(jnp.float32) + pe_table2[:S2][:, None, :]).astype(jnp.bfloat16)
    out4 = jax.block_until_ready(positional_encoding(x4, pe_table2))
    assert out4.dtype == jnp.bfloat16
    assert jnp.allclose(out4.astype(jnp.float32), ref4.astype(jnp.float32),
                        atol=1e-2), "mismatch vs reference (bf16)"

    print("KERNEL_OK")
</pallas_src>

<mosaic_0001>
module attributes {stable_mosaic.version = 11 : i64} {
  func.func @_add_bcast_kernel(%arg0: i32, %arg1: memref<8x2x32xf32, #tpu.memory_space<vmem>>, %arg2: memref<8x1x32xf32, #tpu.memory_space<vmem>>, %arg3: memref<8x2x32xf32, #tpu.memory_space<vmem>>) attributes {dimension_semantics = [#tpu.dimension_semantics<parallel>], iteration_bounds = array<i64: 1>, scalar_prefetch = 0 : i64, scratch_operands = 0 : i64, tpu.core_type = #tpu.core_type<tc>, window_params = [{transform_indices = @transform_0, window_bounds = array<i64: 8, 2, 32>}, {transform_indices = @transform_1, window_bounds = array<i64: 8, 1, 32>}, {transform_indices = @transform_2, window_bounds = array<i64: 8, 2, 32>}]} {
    %c0 = arith.constant 0 : index
    %c0_0 = arith.constant 0 : index
    %c0_1 = arith.constant 0 : index
    %0 = vector.load %arg1[%c0, %c0_0, %c0_1] : memref<8x2x32xf32, #tpu.memory_space<vmem>>, vector<8x2x32xf32>
    %c0_2 = arith.constant 0 : index
    %c0_3 = arith.constant 0 : index
    %c0_4 = arith.constant 0 : index
    %1 = vector.load %arg2[%c0_2, %c0_3, %c0_4] : memref<8x1x32xf32, #tpu.memory_space<vmem>>, vector<8x1x32xf32>
    %2 = vector.broadcast %1 : vector<8x1x32xf32> to vector<8x2x32xf32>
    %3 = arith.addf %0, %2 : vector<8x2x32xf32>
    %c0_5 = arith.constant 0 : index
    %c0_6 = arith.constant 0 : index
    %c0_7 = arith.constant 0 : index
    %4 = vector.load %arg3[%c0_5, %c0_6, %c0_7] : memref<8x2x32xf32, #tpu.memory_space<vmem>>, vector<8x2x32xf32>
    tpu.vector_store %arg3[%c0_5, %c0_6, %c0_7], %3 {strides = array<i32>} : memref<8x2x32xf32, #tpu.memory_space<vmem>>, vector<8x2x32xf32>,
    return
  }
  func.func @transform_0(%arg0: i32) -> (i32, i32, i32) {
    %c0_i32 = arith.constant 0 : i32
    %c0_i32_0 = arith.constant 0 : i32
    %c0_i32_1 = arith.constant 0 : i32
    return %arg0, %c0_i32, %c0_i32_0 : i32, i32, i32
  }
  func.func @transform_1(%arg0: i32) -> (i32, i32, i32) {
    %c0_i32 = arith.constant 0 : i32
    %c0_i32_0 = arith.constant 0 : i32
    %c0_i32_1 = arith.constant 0 : i32
    return %arg0, %c0_i32, %c0_i32_0 : i32, i32, i32
  }
  func.func @transform_2(%arg0: i32) -> (i32, i32, i32) {
    %c0_i32 = arith.constant 0 : i32
    %c0_i32_0 = arith.constant 0 : i32
    %c0_i32_1 = arith.constant 0 : i32
    return %arg0, %c0_i32, %c0_i32_0 : i32, i32, i32
  }
}

</mosaic_0001>

<bundles_post_ra>
// kernel: tpu_custom_call.1
= control target key start
LH: loop header
LB: loop body
LE: loop exit
PB: predicated region body
PF: predicated region fallthrough
CT: control target
= control target key end

     0   :  { %7 = vsyncpa [#allocation3], 0  ;;  %s246_s0 = inlined_call_operand.hbm [shape: f32[8,2,32], index: 0, kind: input, shape index: {}, may-alias: {0,2}]   ;;  %s247_s1 = inlined_call_operand.vmem [shape: f32[8,1,32], index: 1, kind: input, shape index: {}]   ;;  %s248_s2 = inlined_call_operand.hbm [shape: f32[8,2,32], index: 2, kind: output, shape index: {}, may-alias: {0,2}]  }
   0x1   :  { %8 = vsyncpa [#allocation4], 0  ;;  %s180_s9 = smov [#allocation2]  }
   0x2   :  { %s14_s10 = sshll.u32 %s180_s9, 4  ;;  %s15_s10 = int_to_ptr.vmem [resolvable:$true] %s14_s10 }
   0x3   :  { %s144_s11 = scalar_lea.vmem %s15_s10, 256  ;;  %p149_p1 = scmp.lt.s32.totalorder %s15_s10, %s15_s10 }
   0x4   :  { %p145_p0 = scmp.ne.s32.totalorder %s15_s10, %s144_s11  ;;  %p150_p2 = scmp.lt.s32.totalorder %s144_s11, %s144_s11 }
   0x6   :  { %p151_p3 = por %p150_p2, %p149_p1 }
   0x8   :  { %p152_p4 = pnand %p151_p3, %p145_p0 }
   0xa   :  { %155 = shalt.err (!%p152_p4)
}
   0xb   :  { %s181_s12 = smov 32   ;;  %s182_s13 = smov 2  }
   0xc   :  { %20 = dma.hbm_to_vmem [thread:$0]  %s246_s0, 256, %s15_s10, [#allocation3], %s181_s12, %s181_s12, %s182_s13  }
   0xd   :  { %176 = dma.done.wait [#allocation3], 256  }
   0xe   :  { %177 = vsyncadd [#allocation3], 4294967040  ;;  %vm98_vm0 = vcmask 254976   ;;  %s183_s16 = smov [#allocation5]   ;;  %v26_v0 = vld [vmem:[#allocation2] sm:$0x3] }
   0xf   :  { %s205_s17 = sshll.u32 %s183_s16, 4  ;;  %v124_v1 = vld [vmem:[%s247_s1] ss:$0 sm:$0xff]  ;;  %v27_v2 = vld [vmem:[#allocation2 + $0x2] sm:$0x3]  ;;  %s113_s17 = int_to_ptr.vmem [resolvable:$true] %s205_s17 }
  0x10   :  { %v90_v3 = vadd.f32 %v124_v1, %v26_v0  ;;  %v125_v4 = vld [vmem:[%s247_s1 + $0x1] ss:$0 sm:$0xff]  ;;  %v28_v5 = vld [vmem:[#allocation2 + $0x4] sm:$0x3]  ;;  %v126_v6 = vld [vmem:[%s247_s1 + $0x2] ss:$0 sm:$0xff]  ;;  %p161_p6 = scmp.lt.s32.totalorder %s113_s17, %s113_s17 }
  0x11   :  { %v91_v7 = vadd.f32 %v125_v4, %v27_v2  ;;  %v92_v8 = vadd.f32 %v126_v6, %v28_v5  ;;  %v29_v9 = vld [vmem:[#allocation2 + $0x6] sm:$0x3]  ;;  %v127_v10 = vld [vmem:[%s247_s1 + $0x3] ss:$0 sm:$0xff]  ;;  %v30_v11 = vld [vmem:[#allocation2 + $0x8] sm:$0x3] }
  0x12   :  { %99 = vst.msk [vmem:[#allocation5] sm:$0x3] %vm98_vm0, %v90_v3  ;;  %v93_v12 = vadd.f32 %v127_v10, %v29_v9  ;;  %v128_v13 = vld [vmem:[%s247_s1 + $0x4] ss:$0 sm:$0xff]  ;;  %v31_v14 = vld [vmem:[#allocation2 + $0xa] sm:$0x3] }
  0x13   :  { %v129_v15 = vld [vmem:[%s247_s1 + $0x5] ss:$0 sm:$0xff]  ;;  %100 = vst.msk [vmem:[#allocation5 + $0x2] sm:$0x3] %vm98_vm0, %v91_v7  ;;  %101 = vst.msk [vmem:[#allocation5 + $0x4] sm:$0x3] %vm98_vm0, %v92_v8  ;;  %v94_v16 = vadd.f32 %v128_v13, %v30_v11 }
  0x14   :  { %v95_v17 = vadd.f32 %v129_v15, %v31_v14  ;;  %v32_v18 = vld [vmem:[#allocation2 + $0xc] sm:$0x3]  ;;  %v130_v19 = vld [vmem:[%s247_s1 + $0x6] ss:$0 sm:$0xff]  ;;  %v33_v20 = vld [vmem:[#allocation2 + $0xe] sm:$0x3] }
  0x15   :  { %102 = vst.msk [vmem:[#allocation5 + $0x6] sm:$0x3] %vm98_vm0, %v93_v12  ;;  %v96_v21 = vadd.f32 %v130_v19, %v32_v18  ;;  %v131_v22 = vld [vmem:[%s247_s1 + $0x7] ss:$0 sm:$0xff]  ;;  %103 = vst.msk [vmem:[#allocation5 + $0x8] sm:$0x3] %vm98_vm0, %v94_v16 }
  0x16   :  { %104 = vst.msk [vmem:[#allocation5 + $0xa] sm:$0x3] %vm98_vm0, %v95_v17  ;;  %v97_v23 = vadd.f32 %v131_v22, %v33_v20  ;;  %s156_s5 = scalar_lea.vmem %s113_s17, 256 }
  0x17   :  { %105 = vst.msk [vmem:[#allocation5 + $0xc] sm:$0x3] %vm98_vm0, %v96_v21  ;;  %p157_p5 = scmp.ne.s32.totalorder %s113_s17, %s156_s5  ;;  %p162_p7 = scmp.lt.s32.totalorder %s156_s5, %s156_s5 }
  0x18   :  { %106 = vst.msk [vmem:[#allocation5 + $0xe] sm:$0x3] %vm98_vm0, %v97_v23 }
  0x19   :  { %p163_p8 = por %p162_p7, %p161_p6 }
  0x1b   :  { %p164_p9 = pnand %p163_p8, %p157_p5 }
  0x1d   :  { %167 = shalt.err (!%p164_p9)
}
  0x1e   :  { %118 = dma.vmem_to_hbm [thread:$0]  %s113_s17, 256, %s248_s2, [#allocation4], %s181_s12, %s181_s12, %s182_s13  }
  0x1f   :  { %178 = dma.done.wait [#allocation4], 256  }
  0x20   :  { %179 = vsyncadd [#allocation4], 4294967040 }
  0x21   :  { %122 = vsyncpa [#allocation3], 1 }
  0x22   :  { %123 = vsyncpa [#allocation4], 1 }

</bundles_post_ra>
